<compile_context>
chip_gen: v7x
topology: tpu7x:2x2x1
jax: 0.10.0
libtpu: 0.0.40
codegen_flags: <defaults>
</compile_context>

<pallas_src>
import functools

import jax
import jax.numpy as jnp
from jax.experimental import pallas as pl
from jax.experimental.pallas import tpu as pltpu


def _round_up(x, m):
    return ((x + m - 1) // m) * m


def _full_network_kernel(x_ref, w1_ref, b1_ref, w2_ref, b2_ref, out_ref,
                         *, strike, bs_price, num_assets, time_steps):
    """Fused HedgeNetwork + Payoff for one batch tile.

    Layout: batch on the second-to-last axis (MXU M / sublanes), all (T+1)*A
    price features flattened onto the lane axis.
      x_ref  : (tb, (T+1)*A)   flattened price paths; step j = cols [j*A, (j+1)*A)
      w1_ref : (T*A, T*nodes)  block-diagonal linear1 weights
      b1_ref : (1, T*nodes)
      w2_ref : (T*nodes, T*A)  block-diagonal linear2 weights
      b2_ref : (1, T*A)
      out_ref: (tb, 1)         payoff
    """
    ta = time_steps * num_assets                       # 20
    x = x_ref[...]                                     # (tb, 22)

    p_cur = x[:, :ta]                                  # prices at steps 0..T-1
    p_next = x[:, num_assets:]                         # prices at steps 1..T
    incr = p_next - p_cur                              # all price increments at once

    # All T DenseLayers as two block-diagonal matmuls + one tanh batch.
    h = jnp.tanh(jnp.dot(p_cur, w1_ref[...],
                         preferred_element_type=jnp.float32) + b1_ref[...])   # (tb, T*nodes)
    s = jnp.dot(h, w2_ref[...],
                preferred_element_type=jnp.float32) + b2_ref[...]             # (tb, T*A)

    # hedge = sum_j sum_a strategy_j[a] * (price_{j+1}[a] - price_j[a])
    hedge = jnp.sum(s * incr, axis=1, keepdims=True)   # (tb, 1)

    # Payoff on final prices: relu(max_a price_T[a] - strike) - hedge - bs_price
    p_last = x[:, ta:]                                 # (tb, A)
    payoff = jnp.maximum(jnp.max(p_last, axis=1, keepdims=True) - strike, 0.0)
    out_ref[...] = (payoff - hedge - bs_price).astype(out_ref.dtype)


def pack_params(w1, b1, w2, b2):
    """Pack per-step layer params into block-diagonal form (do this ONCE per weight set).

    w1: (T, A, nodes), b1: (T, nodes), w2: (T, nodes, A), b2: (T, A)
    """
    T, A, nodes = w1.shape
    eye = jnp.eye(T, dtype=w1.dtype)
    # W1_blk[j*A+a, j*nodes+n] = w1[j, a, n]
    w1_blk = (eye[:, None, :, None] * w1[:, :, None, :]).reshape(T * A, T * nodes)
    # W2_blk[j*nodes+m, j*A+a] = w2[j, m, a]
    w2_blk = (eye[:, None, :, None] * w2[:, :, None, :]).reshape(T * nodes, T * A)
    b1_row = b1.reshape(1, T * nodes)
    b2_row = b2.reshape(1, T * A)
    return w1_blk, b1_row, w2_blk, b2_row


def full_network_packed(x, packed, *, strike=1.0, bs_price=0.0, tb=512):
    """Pallas TPU FullNetwork.forward using pre-packed params.

    x: (B, T+1, A) float32 price paths.  Returns (B, 1) float32.
    """
    w1_blk, b1_row, w2_blk, b2_row = packed
    B, Tp1, A = x.shape
    T = Tp1 - 1
    F = Tp1 * A
    nodes = w1_blk.shape[1] // T
    assert w1_blk.shape == (T * A, T * nodes) and w2_blk.shape == (T * nodes, T * A)

    # Batch tile: multiple of 8 (sublanes), default 512.  For medium batches split
    # into (at least) two tiles so v7x's two TensorCores both get work; for tiny
    # batches use a single exact tile (no padding).
    b8 = _round_up(B, 8)
    if b8 >= 2 * tb:
        tb_eff = tb
    elif b8 > 256:
        tb_eff = _round_up(pl.cdiv(b8, 2), 8)
    else:
        tb_eff = b8
    n_tiles = pl.cdiv(b8, tb_eff)
    b_pad = n_tiles * tb_eff

    # Free, contiguous reshape — no HBM transpose round-trip for the large input.
    x2 = x.reshape(B, F)
    if b_pad != B:
        # Only copies when B isn't a multiple of the tile; pass B % tb == 0 to avoid.
        x2 = jnp.pad(x2, ((0, b_pad - B), (0, 0)))

    kernel = functools.partial(
        _full_network_kernel, strike=float(strike), bs_price=float(bs_price),
        num_assets=A, time_steps=T)

    out = pl.pallas_call(
        kernel,
        out_shape=jax.ShapeDtypeStruct((b_pad, 1), x.dtype),
        grid=(n_tiles,),
        in_specs=[
            pl.BlockSpec((tb_eff, F), lambda i: (i, 0)),            # contiguous path slab
            pl.BlockSpec((T * A, T * nodes), lambda i: (0, 0)),     # weights resident
            pl.BlockSpec((1, T * nodes), lambda i: (0, 0)),
            pl.BlockSpec((T * nodes, T * A), lambda i: (0, 0)),
            pl.BlockSpec((1, T * A), lambda i: (0, 0)),
        ],
        out_specs=pl.BlockSpec((tb_eff, 1), lambda i: (i, 0)),
        compiler_params=pltpu.CompilerParams(
            dimension_semantics=("parallel",)),                     # batch tiles across TCs
    )(x2, w1_blk, b1_row, w2_blk, b2_row)

    return out[:B]


def full_network(x, w1, b1, w2, b2, *, strike=1.0, bs_price=0.0, tb=512):
    """Convenience wrapper: packs params then calls the kernel.

    For repeated forward calls with fixed weights, call pack_params() once and
    use full_network_packed() directly.
    """
    return full_network_packed(x, pack_params(w1, b1, w2, b2),
                               strike=strike, bs_price=bs_price, tb=tb)


def full_network_ref(x, w1, b1, w2, b2, *, strike=1.0, bs_price=0.0):
    """Pure-JAX reference mirroring the PyTorch forward."""
    B, Tp1, _ = x.shape
    T = Tp1 - 1
    price = x[:, 0, :]
    hedge = jnp.zeros((B, 1), x.dtype)
    for j in range(T):
        h = jnp.tanh(price @ w1[j] + b1[j])
        strategy = h @ w2[j] + b2[j]
        pricenew = x[:, j + 1, :]
        hedge = hedge + jnp.sum(strategy * (pricenew - price), axis=1, keepdims=True)
        price = pricenew
    m = jnp.max(price, axis=1, keepdims=True)
    return jnp.maximum(m - strike, 0.0) - hedge - bs_price


if __name__ == "__main__":
    key = jax.random.PRNGKey(0)
    kx, kw1, kb1, kw2, kb2 = jax.random.split(key, 5)

    # Small shapes consistent with FullNetwork defaults: time_steps=10, num_assets=2, nodes=32.
    B, T, A, nodes = 64, 10, 2, 32
    x = 1.0 + 0.1 * jax.random.normal(kx, (B, T + 1, A), dtype=jnp.float32)
    w1 = 0.5 * jax.random.normal(kw1, (T, A, nodes), dtype=jnp.float32)
    b1 = 0.1 * jax.random.normal(kb1, (T, nodes), dtype=jnp.float32)
    w2 = 0.5 * jax.random.normal(kw2, (T, nodes, A), dtype=jnp.float32)
    b2 = 0.1 * jax.random.normal(kb2, (T, A), dtype=jnp.float32)

    strike, bs_price = 1.0, 0.05

    packed = pack_params(w1, b1, w2, b2)          # once per weight set
    out = full_network_packed(x, packed, strike=strike, bs_price=bs_price)
    out = jax.block_until_ready(out)

    ref = full_network_ref(x, w1, b1, w2, b2, strike=strike, bs_price=bs_price)
    assert out.shape == (B, 1)
    assert jnp.allclose(out, ref, atol=1e-4, rtol=1e-4), (out, ref)

    print("KERNEL_OK")
</pallas_src>

<mosaic_0001>
module attributes {stable_mosaic.version = 11 : i64} {
  func.func @_full_network_kernel(%arg0: i32, %arg1: memref<64x22xf32, #tpu.memory_space<vmem>>, %arg2: memref<20x320xf32, #tpu.memory_space<vmem>>, %arg3: memref<1x320xf32, #tpu.memory_space<vmem>>, %arg4: memref<320x20xf32, #tpu.memory_space<vmem>>, %arg5: memref<1x20xf32, #tpu.memory_space<vmem>>, %arg6: memref<64x1xf32, #tpu.memory_space<vmem>>) attributes {dimension_semantics = [#tpu.dimension_semantics<parallel>], iteration_bounds = array<i64: 1>, scalar_prefetch = 0 : i64, scratch_operands = 0 : i64, tpu.core_type = #tpu.core_type<tc>, window_params = [{transform_indices = @transform_0, window_bounds = array<i64: 64, 22>}, {pipeline_mode = #tpu.pipeline_mode<synchronous>, transform_indices = @transform_1, window_bounds = array<i64: 20, 320>}, {pipeline_mode = #tpu.pipeline_mode<synchronous>, transform_indices = @transform_2, window_bounds = array<i64: 1, 320>}, {pipeline_mode = #tpu.pipeline_mode<synchronous>, transform_indices = @transform_3, window_bounds = array<i64: 320, 20>}, {pipeline_mode = #tpu.pipeline_mode<synchronous>, transform_indices = @transform_4, window_bounds = array<i64: 1, 20>}, {transform_indices = @transform_5, window_bounds = array<i64: 64, 1>}]} {
    %c0 = arith.constant 0 : index
    %c0_0 = arith.constant 0 : index
    %0 = vector.load %arg1[%c0, %c0_0] : memref<64x22xf32, #tpu.memory_space<vmem>>, vector<64x22xf32>
    %1 = vector.extract_strided_slice %0 {offsets = [0, 0], sizes = [64, 20], strides = [1, 1]} : vector<64x22xf32> to vector<64x20xf32>
    %2 = vector.extract_strided_slice %0 {offsets = [0, 2], sizes = [64, 20], strides = [1, 1]} : vector<64x22xf32> to vector<64x20xf32>
    %3 = arith.subf %2, %1 : vector<64x20xf32>
    %c0_1 = arith.constant 0 : index
    %c0_2 = arith.constant 0 : index
    %4 = vector.load %arg2[%c0_1, %c0_2] : memref<20x320xf32, #tpu.memory_space<vmem>>, vector<20x320xf32>
    %cst = arith.constant dense<0.000000e+00> : vector<64x320xf32>
    %5 = tpu.matmul %1, %4, %cst {dimension_numbers = #tpu.dot_dimension_numbers<[1], [0], [0], [1], [0, 0, 1, 1], [], []>} : vector<64x20xf32>, vector<20x320xf32>, vector<64x320xf32> -> vector<64x320xf32>
    %c0_3 = arith.constant 0 : index
    %c0_4 = arith.constant 0 : index
    %6 = vector.load %arg3[%c0_3, %c0_4] : memref<1x320xf32, #tpu.memory_space<vmem>>, vector<1x320xf32>
    %7 = vector.broadcast %6 : vector<1x320xf32> to vector<64x320xf32>
    %8 = arith.addf %5, %7 : vector<64x320xf32>
    %9 = math.tanh %8 : vector<64x320xf32>
    %c0_5 = arith.constant 0 : index
    %c0_6 = arith.constant 0 : index
    %10 = vector.load %arg4[%c0_5, %c0_6] : memref<320x20xf32, #tpu.memory_space<vmem>>, vector<320x20xf32>
    %cst_7 = arith.constant dense<0.000000e+00> : vector<64x20xf32>
    %11 = tpu.matmul %9, %10, %cst_7 {dimension_numbers = #tpu.dot_dimension_numbers<[1], [0], [0], [1], [0, 0, 1, 1], [], []>} : vector<64x320xf32>, vector<320x20xf32>, vector<64x20xf32> -> vector<64x20xf32>
    %c0_8 = arith.constant 0 : index
    %c0_9 = arith.constant 0 : index
    %12 = vector.load %arg5[%c0_8, %c0_9] : memref<1x20xf32, #tpu.memory_space<vmem>>, vector<1x20xf32>
    %13 = vector.broadcast %12 : vector<1x20xf32> to vector<64x20xf32>
    %14 = arith.addf %11, %13 : vector<64x20xf32>
    %15 = arith.mulf %14, %3 : vector<64x20xf32>
    %cst_10 = arith.constant dense<0.000000e+00> : vector<64xf32>
    %16 = vector.multi_reduction <add>, %15, %cst_10 [1] : vector<64x20xf32> to vector<64xf32>
    %17 = vector.shape_cast %16 : vector<64xf32> to vector<64x1xf32>
    %18 = vector.extract_strided_slice %0 {offsets = [0, 20], sizes = [64, 2], strides = [1, 1]} : vector<64x22xf32> to vector<64x2xf32>
    %cst_11 = arith.constant dense<0xFF800000> : vector<64xf32>
    %19 = vector.multi_reduction <maximumf>, %18, %cst_11 [1] : vector<64x2xf32> to vector<64xf32>
    %20 = vector.shape_cast %19 : vector<64xf32> to vector<64x1xf32>
    %cst_12 = arith.constant 1.000000e+00 : f32
    %21 = vector.broadcast %cst_12 : f32 to vector<64x1xf32>
    %22 = arith.subf %20, %21 : vector<64x1xf32>
    %cst_13 = arith.constant 0.000000e+00 : f32
    %23 = vector.broadcast %cst_13 : f32 to vector<64x1xf32>
    %24 = arith.maximumf %22, %23 : vector<64x1xf32>
    %25 = arith.subf %24, %17 : vector<64x1xf32>
    %cst_14 = arith.constant 5.000000e-02 : f32
    %26 = vector.broadcast %cst_14 : f32 to vector<64x1xf32>
    %27 = arith.subf %25, %26 : vector<64x1xf32>
    %c0_15 = arith.constant 0 : index
    %c0_16 = arith.constant 0 : index
    %28 = vector.load %arg6[%c0_15, %c0_16] : memref<64x1xf32, #tpu.memory_space<vmem>>, vector<64x1xf32>
    tpu.vector_store %arg6[%c0_15, %c0_16], %27 {strides = array<i32>} : memref<64x1xf32, #tpu.memory_space<vmem>>, vector<64x1xf32>,
    return
  }
  func.func @transform_0(%arg0: i32) -> (i32, i32) {
    %c0_i32 = arith.constant 0 : i32
    %c0_i32_0 = arith.constant 0 : i32
    return %arg0, %c0_i32 : i32, i32
  }
  func.func @transform_1(%arg0: i32) -> (i32, i32) {
    %c0_i32 = arith.constant 0 : i32
    %c0_i32_0 = arith.constant 0 : i32
    %c0_i32_1 = arith.constant 0 : i32
    return %c0_i32, %c0_i32_0 : i32, i32
  }
  func.func @transform_2(%arg0: i32) -> (i32, i32) {
    %c0_i32 = arith.constant 0 : i32
    %c0_i32_0 = arith.constant 0 : i32
    %c0_i32_1 = arith.constant 0 : i32
    return %c0_i32, %c0_i32_0 : i32, i32
  }
  func.func @transform_3(%arg0: i32) -> (i32, i32) {
    %c0_i32 = arith.constant 0 : i32
    %c0_i32_0 = arith.constant 0 : i32
    %c0_i32_1 = arith.constant 0 : i32
    return %c0_i32, %c0_i32_0 : i32, i32
  }
  func.func @transform_4(%arg0: i32) -> (i32, i32) {
    %c0_i32 = arith.constant 0 : i32
    %c0_i32_0 = arith.constant 0 : i32
    %c0_i32_1 = arith.constant 0 : i32
    return %c0_i32, %c0_i32_0 : i32, i32
  }
  func.func @transform_5(%arg0: i32) -> (i32, i32) {
    %c0_i32 = arith.constant 0 : i32
    %c0_i32_0 = arith.constant 0 : i32
    return %arg0, %c0_i32 : i32, i32
  }
}

</mosaic_0001>

<bundles_post_ra>
// kernel: tpu_custom_call.1
= control target key start
LH: loop header
LB: loop body
LE: loop exit
PB: predicated region body
PF: predicated region fallthrough
CT: control target
= control target key end

     0   :  { %v1059_v3 = vmov 0.0   ;;  %vm111_vm0 = vcmask 1043456   ;;  %vm94_vm1 = vcmask 162816   ;;  %s1060_s25 = smov 2   ;;  %s1061_s28 = smov 126   ;;  %vm410_vm2 = vcmask 523264   ;;  %s1465_s1 = inlined_call_operand.vmem [shape: f32[20,320], index: 1, kind: input, shape index: {}]   ;;  %s1466_s0 = inlined_call_operand.vmem [shape: f32[64,22], index: 0, kind: input, shape index: {}]   ;;  %s1467_s3 = inlined_call_operand.vmem [shape: f32[320,20], index: 3, kind: input, shape index: {}]   ;;  %s1468_s2 = inlined_call_operand.vmem [shape: f32[1,320], index: 2, kind: input, shape index: {}]   ;;  %s1469_s4 = inlined_call_operand.vmem [shape: f32[1,20], index: 4, kind: input, shape index: {}]   ;;  %s1470_s5 = inlined_call_operand.vmem [shape: f32[64,1], index: 5, kind: output, shape index: {}]  }
   0x1   :  { %v69_v0 = vld [vmem:[%s1465_s1 + $0x8] sm:$0xff]  ;;  %v72_v1 = vld [vmem:[%s1465_s1 + $0x20] sm:$0xff]  ;;  %185 = vmatprep.mubr.f32.mxu0 %v1059_v3  ;;  %v71_v5 = vld [vmem:[%s1465_s1 + $0x18] sm:$0xff]  ;;  %vm709_vm3 = vcmask 179360   ;;  %vm766_vm4 = vcmask 7168  }
   0x2   :  { %v68_v2 = vld [vmem:[%s1465_s1] sm:$0xff]  ;;  %v952_v4 = vpack.c.bf16 %v72_v1, %v69_v0  ;;  %v70_v6 = vld [vmem:[%s1465_s1 + $0x10] sm:$0xff]  ;;  %v75_v8 = vld [vmem:[%s1465_s1 + $0x38] sm:$0xf] }
   0x3   :  { %v954_v7 = vpack.c.bf16 %v71_v5, %v68_v2  ;;  %v73_v9 = vld [vmem:[%s1465_s1 + $0x28] sm:$0xff]  ;;  %v1117_v10 = vld [vmem:[%s1466_s0] sm:$0xff]  ;;  %v74_v13 = vld [vmem:[%s1465_s1 + $0x30] sm:$0xf] }
   0x4   :  { %953 = vmatprep.subr.bf16.mxu0 %v952_v4  ;;  %v956_v11 = vpack.c.bf16 %v73_v9, %v70_v6  ;;  %912 = vmatprep.mubr.msk.f32.mxu1 %vm94_vm1, %v1117_v10  ;;  %v76_v12 = vld [vmem:[%s1465_s1 + $0x40] sm:$0xf]  ;;  %v380_v15 = vld [vmem:[%s1467_s3 + $0x88] sm:$0xff]  ;;  %v381_v20 = vld [vmem:[%s1467_s3 + $0x90] sm:$0xff] }
   0x5   :  { %955 = vmatpush1.bf16.msra.mxu0 %v954_v7  ;;  %v379_v14 = vld [vmem:[%s1467_s3 + $0x80] sm:$0xff]  ;;  %v364_v17 = vld [vmem:[%s1467_s3 + $0x8] sm:$0xff]  ;;  %v382_v21 = vld [vmem:[%s1467_s3 + $0x98] sm:$0xff]  ;;  %36 = vrot.lane.b32.xlu0 %v1117_v10, %s1060_s25 }
   0x6   :  { %779 = vmatprep.subr.msk.mxu0 %vm111_vm0, %v75_v8  ;;  %957 = vmatprep.subr.bf16.mxu1 %v956_v11  ;;  %v363_v16 = vld [vmem:[%s1467_s3] sm:$0xff]  ;;  %v960_v18 = vpack.c.bf16 %v380_v15, %v379_v14  ;;  %v1151_v22 = vld [vmem:[%s1466_s0 + $0x8] sm:$0xff]  ;;  %v964_v23 = vpack.c.bf16 %v382_v21, %v381_v20  ;;  %v365_v24 = vld [vmem:[%s1467_s3 + $0x10] sm:$0xff] }
   0x7   :  { %959 = vmatpush3.bf16.msra.mxu1 %v956_v11  ;;  %v962_v19 = vpack.c.bf16 %v364_v17, %v363_v16  ;;  %v366_v25 = vld [vmem:[%s1467_s3 + $0x18] sm:$0xff]  ;;  %v383_v26 = vld [vmem:[%s1467_s3 + $0xa0] sm:$0xff]  ;;  %v384_v27 = vld [vmem:[%s1467_s3 + $0xa8] sm:$0xff] }
   0x8   :  { %910 = vmatprep.subr.msk.mxu1 %vm111_vm0, %v76_v12  ;;  %v1174_v28 = vld [vmem:[%s1466_s0 + $0x10] sm:$0xff]  ;;  %v966_v29 = vpack.c.bf16 %v366_v25, %v365_v24  ;;  %v1181_v30 = vld [vmem:[%s1466_s0 + $0x18] sm:$0xff]  ;;  %v968_v31 = vpack.c.bf16 %v384_v27, %v383_v26  ;;  %v367_v32 = vld [vmem:[%s1467_s3 + $0x20] sm:$0xff] }
   0x9   :  { %780 = vmatpush1.msk.msra.mxu0 %vm111_vm0, %v74_v13  ;;  %v368_v33 = vld [vmem:[%s1467_s3 + $0x28] sm:$0xff]  ;;  %v385_v34 = vld [vmem:[%s1467_s3 + $0xb0] sm:$0xff]  ;;  %v386_v35 = vld [vmem:[%s1467_s3 + $0xb8] sm:$0xff]  ;;  %40 = vrot.lane.b32.xlu1 %v1174_v28, %s1060_s25 }
   0xa   :  { %781 = vmatmul.mubr.msk.f32.vlgmr.msra.gmra.mrb[0].mxu0 %vm94_vm1, %v1117_v10  ;;  %961 = vmatprep.subr.bf16.mxu0 %v960_v18  ;;  %v1203_v36 = vld [vmem:[%s1466_s0 + $0x20] sm:$0xff]  ;;  %v970_v37 = vpack.c.bf16 %v368_v33, %v367_v32  ;;  %v1210_v38 = vld [vmem:[%s1466_s0 + $0x28] sm:$0xff]  ;;  %v972_v39 = vpack.c.bf16 %v386_v35, %v385_v34  ;;  %v369_v40 = vld [vmem:[%s1467_s3 + $0x30] sm:$0xff]  ;;  %v79_v18 = vlaneseq }
   0xb   :  { %191 = vmatprep.mubr.f32.mxu0 %v1059_v3  ;;  %911 = vmatpush3.msk.msra.mxu1 %vm111_vm0, %v76_v12  ;;  %v370_v41 = vld [vmem:[%s1467_s3 + $0x38] sm:$0xff]  ;;  %v387_v42 = vld [vmem:[%s1467_s3 + $0xc0] sm:$0xff]  ;;  %v388_v43 = vld [vmem:[%s1467_s3 + $0xc8] sm:$0xff] }
   0xc   :  { %913 = vmatmul.mubr.msk.f32.vlgmr.msra.gmra.mrb[0].mxu1 %vm94_vm1, %v1151_v22  ;;  %963 = vmatpush3.bf16.msra.mxu0 %v962_v19  ;;  %v1232_v44 = vld [vmem:[%s1466_s0 + $0x30] sm:$0xff]  ;;  %v974_v45 = vpack.c.bf16 %v370_v41, %v369_v40  ;;  %v1239_v46 = vld [vmem:[%s1466_s0 + $0x38] sm:$0xff]  ;;  %v976_v47 = vpack.c.bf16 %v388_v43, %v387_v42  ;;  %v371_v48 = vld [vmem:[%s1467_s3 + $0x40] sm:$0xff]  ;;  %v80_v19 = vshrl.u32 %v79_v18, 7 }
   0xd   :  { %915 = vmatprep.mubr.msk.f32.mxu1 %vm94_vm1, %v1174_v28  ;;  %965 = vmatprep.subr.bf16.mxu0 %v964_v23  ;;  %v372_v49 = vld [vmem:[%s1467_s3 + $0x48] sm:$0xff]  ;;  %v389_v51 = vld [vmem:[%s1467_s3 + $0xd0] sm:$0xff]  ;;  %v390_v52 = vld [vmem:[%s1467_s3 + $0xd8] sm:$0xff] }
   0xe   :  { %782 = vmatmul.mubr.msk.f32.gmra.mrb[2].mxu0 %vm94_vm1, %v1151_v22  ;;  %v978_v50 = vpack.c.bf16 %v372_v49, %v371_v48  ;;  %v395_v53 = vld [vmem:[%s1467_s3 + $0x100] sm:$0xff]  ;;  %v980_v54 = vpack.c.bf16 %v390_v52, %v389_v51  ;;  %v373_v55 = vld [vmem:[%s1467_s3 + $0x50] sm:$0xff]  ;;  %v374_v56 = vld [vmem:[%s1467_s3 + $0x58] sm:$0xff]  ;;  %38 = vrot.lane.b32.xlu0 %v1151_v22, %s1060_s25  ;;  %v81_v25 = vsub.s32 0, %v80_v19  ;;  %v89_v33 = vsub.s32 2, %v80_v19 }
   0xf   :  { %197 = vmatprep.mubr.f32.mxu0 %v1059_v3  ;;  %v396_v57 = vld [vmem:[%s1467_s3 + $0x108] sm:$0xff]  ;;  %v982_v58 = vpack.c.bf16 %v374_v56, %v373_v55  ;;  %v391_v60 = vld [vmem:[%s1467_s3 + $0xe0] sm:$0xff]  ;;  %v397_v62 = vld [vmem:[%s1467_s3 + $0x110] sm:$0xff]  ;;  %42 = vrot.lane.b32.xlu1 %v1181_v30, %s1060_s25 }
  0x10   :  { %916 = vmatmul.mubr.msk.f32.gmra.mrb[2].mxu1 %vm94_vm1, %v1181_v30  ;;  %967 = vmatpush3.bf16.msra.mxu0 %v966_v29  ;;  %v992_v59 = vpack.c.bf16 %v396_v57, %v395_v53  ;;  %v392_v61 = vld [vmem:[%s1467_s3 + $0xe8] sm:$0xff]  ;;  %v375_v0 = vld [vmem:[%s1467_s3 + $0x60] sm:$0xff]  ;;  %v398_v2 = vld [vmem:[%s1467_s3 + $0x118] sm:$0xff] }
  0x11   :  { %918 = vmatprep.mubr.msk.f32.mxu1 %vm94_vm1, %v1203_v36  ;;  %969 = vmatprep.subr.bf16.mxu0 %v968_v31  ;;  %v984_v63 = vpack.c.bf16 %v392_v61, %v391_v60  ;;  %v376_v1 = vld [vmem:[%s1467_s3 + $0x68] sm:$0xff]  ;;  %v996_v4 = vpack.c.bf16 %v398_v2, %v397_v62  ;;  %v393_v5 = vld [vmem:[%s1467_s3 + $0xf0] sm:$0xff]  ;;  %v394_v6 = vld [vmem:[%s1467_s3 + $0xf8] sm:$0xff]  ;;  %v85_v31 = vsub.s32 1, %v80_v19 }
  0x12   :  { %783 = vmatmul.mubr.msk.f32.gmra.mrb[4].mxu0 %vm94_vm1, %v1174_v28  ;;  %993 = vmatprep.subr.bf16.mxu1 %v992_v59  ;;  %v399_v7 = vld [vmem:[%s1467_s3 + $0x120] sm:$0xff]  ;;  %v988_v8 = vpack.c.bf16 %v394_v6, %v393_v5  ;;  %v377_v9 = vld [vmem:[%s1467_s3 + $0x70] sm:$0xff]  ;;  %v378_v11 = vld [vmem:[%s1467_s3 + $0x78] sm:$0xff] }
  0x13   :  { %203 = vmatprep.mubr.f32.mxu0 %v1059_v3  ;;  %995 = vmatpush3.bf16.msra.mxu1 %v992_v59  ;;  %v400_v12 = vld [vmem:[%s1467_s3 + $0x128] sm:$0xff]  ;;  %v990_v13 = vpack.c.bf16 %v378_v11, %v377_v9  ;;  %v401_v15 = vld [vmem:[%s1467_s3 + $0x130] sm:$0xff]  ;;  %v402_v16 = vld [vmem:[%s1467_s3 + $0x138] sm:$0xff] }
  0x14   :  { %919 = vmatmul.mubr.msk.f32.gmra.mrb[4].mxu1 %vm94_vm1, %v1210_v38  ;;  %971 = vmatpush3.bf16.msra.mxu0 %v970_v37  ;;  %v1000_v14 = vpack.c.bf16 %v400_v12, %v399_v7  ;;  %v1004_v17 = vpack.c.bf16 %v402_v16, %v401_v15  ;;  %v77_v29 = vld [vmem:[%s1468_s2] sm:$0x7] }
  0x15   :  { %921 = vmatprep.mubr.msk.f32.mxu1 %vm94_vm1, %v1232_v44  ;;  %973 = vmatprep.subr.bf16.mxu0 %v972_v39  ;;  %v1349_v35 = vrot.slane %v77_v29, %v81_v25  ;;  %v1351_v40 = vrot.slane %v77_v29, %v85_v31  ;;  %v1354_v42 = vrot.slane %v77_v29, %v89_v33 }
  0x16   :  { %784 = vmatmul.mubr.msk.f32.gmra.mrb[6].mxu0 %vm94_vm1, %v1181_v30  ;;  %997 = vmatprep.subr.bf16.mxu1 %v996_v4 }
  0x17   :  { %209 = vmatprep.mubr.f32.mxu0 %v1059_v3  ;;  %999 = vmatpush3.bf16.msra.mxu1 %v996_v4 }
  0x18   :  { %922 = vmatmul.mubr.msk.f32.gmra.mrb[6].mxu1 %vm94_vm1, %v1239_v46  ;;  %975 = vmatpush3.bf16.msra.mxu0 %v974_v45 }
  0x19   :  { %977 = vmatprep.subr.bf16.mxu0 %v976_v47  ;;  %44 = vrot.lane.b32.xlu0 %v1203_v36, %s1060_s25 }
  0x1a   :  { %785 = vmatmul.mubr.msk.f32.gmra.mrb[8].mxu0 %vm94_vm1, %v1203_v36  ;;  %46 = vrot.lane.b32.xlu1 %v1210_v38, %s1060_s25 }
  0x1b   :  { %215 = vmatprep.mubr.f32.mxu0 %v1059_v3  ;;  %1001 = vmatprep.subr.bf16.mxu1 %v1000_v14 }
  0x1c   :  { %979 = vmatpush3.bf16.msra.mxu0 %v978_v50  ;;  %1003 = vmatpush3.bf16.msra.mxu1 %v1000_v14 }
  0x1d   :  { %981 = vmatprep.subr.bf16.mxu0 %v980_v54  ;;  %48 = vrot.lane.b32.xlu0 %v1232_v44, %s1060_s25 }
  0x1e   :  { %786 = vmatmul.mubr.msk.f32.gmra.mrb[10].mxu0 %vm94_vm1, %v1210_v38  ;;  %50 = vrot.lane.b32.xlu1 %v1239_v46, %s1060_s25 }
  0x1f   :  { %221 = vmatprep.mubr.f32.mxu0 %v1059_v3  ;;  %1005 = vmatprep.subr.bf16.mxu1 %v1004_v17 }
  0x20   :  { %983 = vmatpush3.bf16.msra.mxu0 %v982_v58  ;;  %1007 = vmatpush3.bf16.msra.mxu1 %v1004_v17 }
  0x21   :  { %985 = vmatprep.subr.bf16.mxu0 %v984_v63 }
  0x22   :  { %787 = vmatmul.mubr.msk.f32.gmra.mrb[12].mxu0 %vm94_vm1, %v1232_v44 }
  0x23   :  { %227 = vmatprep.mubr.f32.mxu0 %v1059_v3  ;;  %v986_v3 = vpack.c.bf16 %v376_v1, %v375_v0 }
  0x25   :  { %987 = vmatpush3.bf16.msra.mxu0 %v986_v3 }
  0x26   :  { %788 = vmatmul.mubr.msk.f32.gmra.mrb[14].mxu0 %vm94_vm1, %v1239_v46  ;;  %989 = vmatprep.subr.bf16.mxu0 %v988_v8 }
  0x29   :  { %991 = vmatpush3.bf16.msra.mxu0 %v990_v13 }
  0x77   :  { %v37_v20 = vpop.permute.xlu0 %36 }
  0x78   :  { %v60_v23 = vsub.f32 %v1117_v10, %v37_v20 }
  0x7a   :  { %653 = vrot.lane.b32.xlu0 %v60_v23, %s1061_s28 }
  0x7b   :  { %v41_v21 = vpop.permute.xlu1 %40 }
  0x7c   :  { %v62_v24 = vsub.f32 %v1174_v28, %v41_v21 }
  0x7e   :  { %657 = vrot.lane.b32.xlu0 %v62_v24, %s1061_s28 }
  0x80   :  { %v39_v26 = vpop.permute.xlu0 %38 }
  0x81   :  { %v43_v27 = vpop.permute.xlu1 %42  ;;  %v61_v32 = vsub.f32 %v1151_v22, %v39_v26 }
  0x82   :  { %v63_v34 = vsub.f32 %v1181_v30, %v43_v27 }
  0x83   :  { %655 = vrot.lane.b32.xlu1 %v61_v32, %s1061_s28 }
  0x87   :  { %659 = vrot.lane.b32.xlu1 %v63_v34, %s1061_s28 }
  0x8b   :  { %v45_v37 = vpop.permute.xlu0 %44 }
  0x8c   :  { %v47_v39 = vpop.permute.xlu1 %46  ;;  %v64_v41 = vsub.f32 %v1203_v36, %v45_v37 }
  0x8d   :  { %v65_v45 = vsub.f32 %v1210_v38, %v47_v39 }
  0x8e   :  { %661 = vrot.lane.b32.xlu0 %v64_v41, %s1061_s28 }
  0x8f   :  { %v49_v49 = vpop.permute.xlu0 %48  ;;  %663 = vrot.lane.b32.xlu1 %v65_v45, %s1061_s28 }
  0x90   :  { %v66_v52 = vsub.f32 %v1232_v44, %v49_v49  ;;  %v51_v53 = vpop.permute.xlu1 %50 }
  0x91   :  { %v67_v58 = vsub.f32 %v1239_v46, %v51_v53 }
  0x92   :  { %665 = vrot.lane.b32.xlu0 %v66_v52, %s1061_s28 }
  0x93   :  { %667 = vrot.lane.b32.xlu1 %v67_v58, %s1061_s28 }
  0xdd   :  { %v187_v43 = vpop.f32.mrb[0].mxu0 }
  0xde   :  { %v188_v47 = vadd.f32 %v187_v43, %v1349_v35  ;;  %v189_v48 = vpop.f32.mrb[1].mxu0 }
  0xdf   :  { %v190_v50 = vadd.f32 %v189_v48, %v1351_v40  ;;  %v914_v51 = vpop.f32.mrb[0].mxu1 }
  0xe0   :  { %1011 = vtanh.f32 %v188_v47  ;;  %v306_v54 = vadd.f32 %v914_v51, %v1354_v42  ;;  %v300_v55 = vpop.f32.mrb[1].mxu1 }
  0xe1   :  { %1013 = vtanh.f32 %v190_v50  ;;  %v193_v56 = vpop.f32.mrb[2].mxu0  ;;  %v301_v57 = vadd.f32 %v300_v55, %v1354_v42 }
  0xe2   :  { %v194_v59 = vadd.f32 %v193_v56, %v1349_v35  ;;  %1015 = vtanh.f32 %v306_v54  ;;  %v195_v60 = vpop.f32.mrb[3].mxu0 }
  0xe3   :  { %v196_v61 = vadd.f32 %v195_v60, %v1351_v40  ;;  %1017 = vtanh.f32 %v301_v57  ;;  %v917_v62 = vpop.f32.mrb[2].mxu1 }
  0xe4   :  { %1019 = vtanh.f32 %v194_v59  ;;  %v316_v63 = vadd.f32 %v917_v62, %v1354_v42  ;;  %v310_v0 = vpop.f32.mrb[3].mxu1  ;;  %v710_v62 = vsel %vm709_vm3, %v1117_v10, -inf  ;;  %v722_v10 = vsel %vm709_vm3, %v1203_v36, -inf }
  0xe5   :  { %1021 = vtanh.f32 %v196_v61  ;;  %v199_v1 = vpop.f32.mrb[4].mxu0  ;;  %v311_v2 = vadd.f32 %v310_v0, %v1354_v42  ;;  %711 = vmax.xlane.f32.xlu0 %v710_v62 }
  0xe6   :  { %v200_v3 = vadd.f32 %v199_v1, %v1349_v35  ;;  %v201_v4 = vpop.f32.mrb[5].mxu0  ;;  %1023 = vtanh.f32 %v316_v63 }
  0xe7   :  { %v202_v5 = vadd.f32 %v201_v4, %v1351_v40  ;;  %1025 = vtanh.f32 %v311_v2  ;;  %v920_v6 = vpop.f32.mrb[4].mxu1  ;;  %v713_v2 = vsel %vm709_vm3, %v1151_v22, -inf  ;;  %v731_v22 = vsel %vm709_vm3, %v1239_v46, -inf }
  0xe8   :  { %1027 = vtanh.f32 %v200_v3  ;;  %v326_v7 = vadd.f32 %v920_v6, %v1354_v42  ;;  %v320_v8 = vpop.f32.mrb[5].mxu1  ;;  %714 = vmax.xlane.f32.xlu1 %v713_v2  ;;  %v725_v6 = vsel %vm709_vm3, %v1210_v38, -inf }
  0xe9   :  { %1029 = vtanh.f32 %v202_v5  ;;  %v205_v9 = vpop.f32.mrb[6].mxu0  ;;  %v321_v11 = vadd.f32 %v320_v8, %v1354_v42  ;;  %v719_v5 = vsel %vm709_vm3, %v1181_v30, -inf  ;;  %v1415_v30 = vld [vmem:[%s1469_s4] ss:$0 sm:$0xff] }
  0xea   :  { %v1012_v12 = vpop.eup %1011  ;;  %v206_v13 = vadd.f32 %v205_v9, %v1349_v35  ;;  %v207_v14 = vpop.f32.mrb[7].mxu0  ;;  %1031 = vtanh.f32 %v326_v7 }
  0xeb   :  { %v1014_v15 = vpop.eup %1013  ;;  %v208_v16 = vadd.f32 %v207_v14, %v1351_v40  ;;  %1033 = vtanh.f32 %v321_v11  ;;  %v923_v17 = vpop.f32.mrb[6].mxu1 }
  0xec   :  { %v1016_v18 = vpop.eup %1015  ;;  %1035 = vtanh.f32 %v206_v13  ;;  %499 = vmatprep.mubr.f32.mxu0 %v1014_v15  ;;  %v336_v19 = vadd.f32 %v923_v17, %v1354_v42  ;;  %v330_v20 = vpop.f32.mrb[7].mxu1  ;;  %723 = vmax.xlane.f32.xlu1 %v722_v10 }
  0xed   :  { %v1018_v21 = vpop.eup %1017  ;;  %1037 = vtanh.f32 %v208_v16  ;;  %v211_v23 = vpop.f32.mrb[8].mxu0  ;;  %500 = vmatmul.mubr.f32.vlgmr.msra.gmra.mrb[16].mxu0 %v1012_v12  ;;  %v331_v24 = vadd.f32 %v330_v20, %v1354_v42 }
  0xee   :  { %v1020_v25 = vpop.eup %1019  ;;  %v212_v26 = vadd.f32 %v211_v23, %v1349_v35  ;;  %v213_v27 = vpop.f32.mrb[9].mxu0  ;;  %940 = vmatprep.mubr.msk.f32.mxu1 %vm410_vm2, %v1018_v21  ;;  %1039 = vtanh.f32 %v336_v19 }
  0xef   :  { %v1022_v29 = vpop.eup %1021  ;;  %v214_v31 = vadd.f32 %v213_v27, %v1351_v40  ;;  %941 = vmatmul.mubr.msk.f32.vlgmr.msra.gmra.mrb[8].mxu1 %vm410_vm2, %v1016_v18  ;;  %1041 = vtanh.f32 %v331_v24  ;;  %v654_v13 = vpop.permute.xlu0 %653 }
  0xf0   :  { %v1024_v32 = vpop.eup %1023  ;;  %504 = vmatprep.mubr.f32.mxu0 %v1022_v29 }
  0xf1   :  { %v1026_v33 = vpop.eup %1025  ;;  %1043 = vtanh.f32 %v214_v31  ;;  %v217_v34 = vpop.f32.mrb[10].mxu0  ;;  %505 = vmatmul.mubr.f32.gmra.mrb[18].mxu0 %v1020_v25 }
  0xf2   :  { %v1028_v37 = vpop.eup %1027  ;;  %1045 = vtanh.f32 %v212_v26  ;;  %v218_v39 = vadd.f32 %v217_v34, %v1349_v35  ;;  %v219_v41 = vpop.f32.mrb[11].mxu0  ;;  %943 = vmatprep.mubr.msk.f32.mxu1 %vm410_vm2, %v1026_v33 }
  0xf3   :  { %v1030_v42 = vpop.eup %1029  ;;  %v220_v43 = vadd.f32 %v219_v41, %v1351_v40  ;;  %944 = vmatmul.mubr.msk.f32.gmra.mrb[10].mxu1 %vm410_vm2, %v1024_v32  ;;  %v658_v34 = vpop.permute.xlu0 %657 }
  0xf4   :  { %v1032_v45 = vpop.eup %1031  ;;  %509 = vmatprep.mubr.f32.mxu0 %v1030_v42 }
  0xf5   :  { %v1034_v47 = vpop.eup %1033  ;;  %1047 = vtanh.f32 %v220_v43  ;;  %v223_v48 = vpop.f32.mrb[12].mxu0  ;;  %510 = vmatmul.mubr.f32.gmra.mrb[20].mxu0 %v1028_v37 }
  0xf6   :  { %v1036_v49 = vpop.eup %1035  ;;  %1049 = vtanh.f32 %v218_v39  ;;  %v224_v50 = vadd.f32 %v223_v48, %v1349_v35  ;;  %v225_v51 = vpop.f32.mrb[13].mxu0  ;;  %946 = vmatprep.mubr.msk.f32.mxu1 %vm410_vm2, %v1034_v47 }
  0xf7   :  { %v1038_v52 = vpop.eup %1037  ;;  %v226_v53 = vadd.f32 %v225_v51, %v1351_v40  ;;  %947 = vmatmul.mubr.msk.f32.gmra.mrb[12].mxu1 %vm410_vm2, %v1032_v45  ;;  %v656_v21 = vpop.permute.xlu1 %655 }
  0xf8   :  { %v1040_v54 = vpop.eup %1039  ;;  %514 = vmatprep.mubr.f32.mxu0 %v1038_v52 }
  0xf9   :  { %v1042_v55 = vpop.eup %1041  ;;  %1051 = vtanh.f32 %v226_v53  ;;  %v229_v56 = vpop.f32.mrb[14].mxu0  ;;  %515 = vmatmul.mubr.f32.gmra.mrb[22].mxu0 %v1036_v49 }
  0xfa   :  { %1053 = vtanh.f32 %v224_v50  ;;  %v230_v57 = vadd.f32 %v229_v56, %v1349_v35  ;;  %v231_v58 = vpop.f32.mrb[15].mxu0  ;;  %949 = vmatprep.mubr.msk.f32.mxu1 %vm410_vm2, %v1042_v55  ;;  %v716_v35 = vsel %vm709_vm3, %v1174_v28, -inf  ;;  %v728_v28 = vsel %vm709_vm3, %v1232_v44, -inf }
  0xfb   :  { %v1044_v59 = vpop.eup %1043  ;;  %v232_v60 = vadd.f32 %v231_v58, %v1351_v40  ;;  %950 = vmatmul.mubr.msk.f32.gmra.mrb[14].mxu1 %vm410_vm2, %v1040_v54  ;;  %717 = vmax.xlane.f32.xlu0 %v716_v35  ;;  %v660_v50 = vpop.permute.xlu1 %659 }
  0xfc   :  { %v1046_v61 = vpop.eup %1045  ;;  %519 = vmatprep.mubr.f32.mxu0 %v1044_v59  ;;  %729 = vmax.xlane.f32.xlu1 %v728_v28 }
  0xfd   :  { %1055 = vtanh.f32 %v232_v60  ;;  %520 = vmatmul.mubr.f32.gmra.mrb[24].mxu0 %v1046_v61 }
  0xfe   :  { %1057 = vtanh.f32 %v230_v57 }
  0xff   :  { %v1048_v63 = vpop.eup %1047  ;;  %720 = vmax.xlane.f32.xlu0 %v719_v5 }
 0x100   :  { %v1050_v0 = vpop.eup %1049  ;;  %524 = vmatprep.mubr.f32.mxu0 %v1048_v63  ;;  %v662_v58 = vpop.permute.xlu0 %661 }
 0x101   :  { %525 = vmatmul.mubr.f32.gmra.mrb[26].mxu0 %v1050_v0 }
 0x103   :  { %v1052_v1 = vpop.eup %1051  ;;  %726 = vmax.xlane.f32.xlu0 %v725_v6 }
 0x104   :  { %v1054_v40 = vpop.eup %1053  ;;  %529 = vmatprep.mubr.f32.mxu0 %v1052_v1  ;;  %v664_v1 = vpop.permute.xlu1 %663 }
 0x105   :  { %530 = vmatmul.mubr.f32.gmra.mrb[28].mxu0 %v1054_v40  ;;  %v666_v6 = vpop.permute.xlu0 %665 }
 0x107   :  { %v1056_v3 = vpop.eup %1055  ;;  %732 = vmax.xlane.f32.xlu0 %v731_v22 }
 0x108   :  { %v1058_v4 = vpop.eup %1057  ;;  %534 = vmatprep.mubr.f32.mxu0 %v1056_v3 }
 0x109   :  { %535 = vmatmul.mubr.f32.gmra.mrb[30].mxu0 %v1058_v4 }
 0x1c0   :  { %v866_v7 = vpop.f32.mrb[16].mxu0 }
 0x1c1   :  { %v867_v8 = vpop.f32.mrb[17].mxu0 }
 0x1c2   :  { %v868_v36 = vadd.f32 %v867_v8, %v866_v7  ;;  %v942_v9 = vpop.f32.mrb[8].mxu1 }
 0x1c3   :  { %v606_v11 = vpop.f32.mrb[9].mxu1 }
 0x1c4   :  { %v869_v44 = vpop.f32.mrb[18].mxu0  ;;  %v502_v12 = vadd.f32 %v868_v36, %v1415_v30 }
 0x1c5   :  { %v870_v38 = vpop.f32.mrb[19].mxu0 }
 0x1c6   :  { %v871_v14 = vadd.f32 %v870_v38, %v869_v44  ;;  %v607_v15 = vadd.f32 %v606_v11, %v502_v12  ;;  %v945_v16 = vpop.f32.mrb[10].mxu1  ;;  %v668_v11 = vpop.permute.xlu1 %667 }
 0x1c7   :  { %v616_v46 = vpop.f32.mrb[11].mxu1 }
 0x1c8   :  { %v507_v17 = vadd.f32 %v871_v14, %v1415_v30  ;;  %v677_v18 = vmul.f32 %v654_v13, %v607_v15  ;;  %v872_v19 = vpop.f32.mrb[20].mxu0  ;;  %v712_v14 = vpop.xlane.xlu0 %711 }
 0x1c9   :  { %v873_v20 = vpop.f32.mrb[21].mxu0 }
 0x1ca   :  { %v874_v23 = vadd.f32 %v873_v20, %v872_v19  ;;  %v612_v24 = vadd.f32 %v942_v9, %v507_v17  ;;  %v685_v25 = vsel %vm94_vm1, %v677_v18, 0.0  ;;  %v948_v26 = vpop.f32.mrb[12].mxu1  ;;  %v807_v19 = vadd.f32 -1.0, %v712_v14 }
 0x1cb   :  { %686 = vadd.xlane.f32.xlu1 %v685_v25  ;;  %v626_v27 = vpop.f32.mrb[13].mxu1 }
 0x1cc   :  { %v678_v29 = vmul.f32 %v656_v21, %v612_v24  ;;  %v875_v31 = vpop.f32.mrb[22].mxu0  ;;  %v512_v32 = vadd.f32 %v874_v23, %v1415_v30  ;;  %v718_v15 = vpop.xlane.xlu0 %717  ;;  %v742_v21 = vmax.f32 %v807_v19, 0.0 }
 0x1cd   :  { %v876_v33 = vpop.f32.mrb[23].mxu0 }
 0x1ce   :  { %v877_v37 = vadd.f32 %v876_v33, %v875_v31  ;;  %v617_v39 = vadd.f32 %v616_v46, %v512_v32  ;;  %v688_v41 = vsel %vm94_vm1, %v678_v29, 0.0  ;;  %v951_v42 = vpop.f32.mrb[14].mxu1 }
 0x1cf   :  { %689 = vadd.xlane.f32.xlu0 %v688_v41  ;;  %v636_v43 = vpop.f32.mrb[15].mxu1 }
 0x1d0   :  { %v517_v45 = vadd.f32 %v877_v37, %v1415_v30  ;;  %v679_v47 = vmul.f32 %v658_v34, %v617_v39  ;;  %v878_v48 = vpop.f32.mrb[24].mxu0  ;;  %v721_v46 = vpop.xlane.xlu0 %720 }
 0x1d1   :  { %v879_v49 = vpop.f32.mrb[25].mxu0  ;;  %v810_v34 = vadd.f32 -1.0, %v721_v46 }
 0x1d2   :  { %v880_v51 = vadd.f32 %v879_v49, %v878_v48  ;;  %v622_v52 = vadd.f32 %v945_v16, %v517_v45  ;;  %v691_v53 = vsel %vm94_vm1, %v679_v47, 0.0  ;;  %v715_v16 = vpop.xlane.xlu1 %714 }
 0x1d3   :  { %692 = vadd.xlane.f32.xlu1 %v691_v53 }
 0x1d4   :  { %v680_v54 = vmul.f32 %v660_v50, %v622_v52  ;;  %v881_v55 = vpop.f32.mrb[26].mxu0  ;;  %v522_v56 = vadd.f32 %v880_v51, %v1415_v30  ;;  %v727_v18 = vpop.xlane.xlu0 %726 }
 0x1d5   :  { %v882_v57 = vpop.f32.mrb[27].mxu0  ;;  %v812_v50 = vadd.f32 -1.0, %v727_v18 }
 0x1d6   :  { %v883_v59 = vadd.f32 %v882_v57, %v881_v55  ;;  %v627_v60 = vadd.f32 %v626_v27, %v522_v56  ;;  %v694_v61 = vsel %vm94_vm1, %v680_v54, 0.0  ;;  %v724_v17 = vpop.xlane.xlu1 %723  ;;  %v809_v27 = vadd.f32 -1.0, %v718_v15 }
 0x1d7   :  { %695 = vadd.xlane.f32.xlu0 %v694_v61  ;;  %v747_v55 = vmax.f32 %v812_v50, 0.0 }
 0x1d8   :  { %v527_v62 = vadd.f32 %v883_v59, %v1415_v30  ;;  %v681_v63 = vmul.f32 %v662_v58, %v627_v60  ;;  %v884_v0 = vpop.f32.mrb[28].mxu0  ;;  %v733_v23 = vpop.xlane.xlu0 %732  ;;  %v744_v33 = vmax.f32 %v809_v27, 0.0 }
 0x1d9   :  { %v885_v35 = vpop.f32.mrb[29].mxu0  ;;  %v814_v60 = vadd.f32 -1.0, %v733_v23 }
 0x1da   :  { %v886_v40 = vadd.f32 %v885_v35, %v884_v0  ;;  %v632_v2 = vadd.f32 %v948_v26, %v527_v62  ;;  %v697_v3 = vsel %vm94_vm1, %v681_v63, 0.0  ;;  %v730_v20 = vpop.xlane.xlu1 %729 }
 0x1db   :  { %698 = vadd.xlane.f32.xlu1 %v697_v3  ;;  %v813_v54 = vadd.f32 -1.0, %v730_v20  ;;  %v749_v0 = vmax.f32 %v814_v60, 0.0 }
 0x1dc   :  { %v682_v4 = vmul.f32 %v664_v1, %v632_v2  ;;  %v887_v10 = vpop.f32.mrb[30].mxu0  ;;  %v532_v5 = vadd.f32 %v886_v40, %v1415_v30 }
 0x1dd   :  { %v888_v28 = vpop.f32.mrb[31].mxu0  ;;  %v748_v59 = vmax.f32 %v813_v54, 0.0 }
 0x1de   :  { %v889_v22 = vadd.f32 %v888_v28, %v887_v10  ;;  %v637_v7 = vadd.f32 %v636_v43, %v532_v5  ;;  %v700_v8 = vsel %vm94_vm1, %v682_v4, 0.0  ;;  %v745_v43 = vmax.f32 %v810_v34, 0.0 }
 0x1df   :  { %701 = vadd.xlane.f32.xlu0 %v700_v8 }
 0x1e0   :  { %v537_v36 = vadd.f32 %v889_v22, %v1415_v30  ;;  %v683_v9 = vmul.f32 %v666_v6, %v637_v7  ;;  %v808_v30 = vadd.f32 -1.0, %v715_v16 }
 0x1e2   :  { %v642_v44 = vadd.f32 %v951_v42, %v537_v36  ;;  %v703_v12 = vsel %vm94_vm1, %v683_v9, 0.0  ;;  %v743_v25 = vmax.f32 %v808_v30, 0.0  ;;  %v811_v42 = vadd.f32 -1.0, %v724_v17 }
 0x1e3   :  { %704 = vadd.xlane.f32.xlu1 %v703_v12 }
 0x1e4   :  { %v684_v38 = vmul.f32 %v668_v11, %v642_v44  ;;  %v746_v49 = vmax.f32 %v811_v42, 0.0 }
 0x1e6   :  { %v706_v13 = vsel %vm94_vm1, %v684_v38, 0.0 }
 0x1e7   :  { %707 = vadd.xlane.f32.xlu0 %v706_v13 }
 0x258   :  { %v687_v24 = vpop.xlane.xlu1 %686 }
 0x259   :  { %v750_v26 = vsub.f32 %v742_v21, %v687_v24 }
 0x25b   :  { %v815_v29 = vadd.f32 -0.05, %v750_v26 }
 0x25c   :  { %v690_v31 = vpop.xlane.xlu0 %689 }
 0x25d   :  { %767 = vst.msk [vmem:[%s1470_s5] sm:$0xff] %vm766_vm4, %v815_v29  ;;  %v751_v32 = vsub.f32 %v743_v25, %v690_v31 }
 0x25f   :  { %v816_v37 = vadd.f32 -0.05, %v751_v32 }
 0x260   :  { %v693_v39 = vpop.xlane.xlu1 %692 }
 0x261   :  { %768 = vst.msk [vmem:[%s1470_s5 + $0x8] sm:$0xff] %vm766_vm4, %v816_v37  ;;  %v752_v41 = vsub.f32 %v744_v33, %v693_v39 }
 0x263   :  { %v817_v45 = vadd.f32 -0.05, %v752_v41 }
 0x264   :  { %v696_v47 = vpop.xlane.xlu0 %695 }
 0x265   :  { %769 = vst.msk [vmem:[%s1470_s5 + $0x10] sm:$0xff] %vm766_vm4, %v817_v45  ;;  %v753_v48 = vsub.f32 %v745_v43, %v696_v47 }
 0x267   :  { %v818_v51 = vadd.f32 -0.05, %v753_v48 }
 0x268   :  { %v699_v52 = vpop.xlane.xlu1 %698 }
 0x269   :  { %770 = vst.msk [vmem:[%s1470_s5 + $0x18] sm:$0xff] %vm766_vm4, %v818_v51  ;;  %v754_v53 = vsub.f32 %v746_v49, %v699_v52 }
 0x26b   :  { %v819_v56 = vadd.f32 -0.05, %v754_v53 }
 0x26c   :  { %v702_v57 = vpop.xlane.xlu0 %701 }
 0x26d   :  { %771 = vst.msk [vmem:[%s1470_s5 + $0x20] sm:$0xff] %vm766_vm4, %v819_v56  ;;  %v755_v58 = vsub.f32 %v747_v55, %v702_v57 }
 0x26f   :  { %v820_v61 = vadd.f32 -0.05, %v755_v58 }
 0x270   :  { %v705_v62 = vpop.xlane.xlu1 %704 }
 0x271   :  { %772 = vst.msk [vmem:[%s1470_s5 + $0x28] sm:$0xff] %vm766_vm4, %v820_v61  ;;  %v756_v63 = vsub.f32 %v748_v59, %v705_v62 }
 0x273   :  { %v821_v35 = vadd.f32 -0.05, %v756_v63 }
 0x274   :  { %v708_v1 = vpop.xlane.xlu0 %707 }
 0x275   :  { %773 = vst.msk [vmem:[%s1470_s5 + $0x30] sm:$0xff] %vm766_vm4, %v821_v35  ;;  %v757_v40 = vsub.f32 %v749_v0, %v708_v1 }
 0x277   :  { %v822_v2 = vadd.f32 -0.05, %v757_v40 }
 0x279   :  { %774 = vst.msk [vmem:[%s1470_s5 + $0x38] sm:$0xff] %vm766_vm4, %v822_v2 }

</bundles_post_ra>
